<compile_context>
chip_gen: v6e
topology: v6e:2x2x1
jax: 0.10.0
libtpu: 0.0.40
codegen_flags: <defaults>
</compile_context>

<pallas_src>
import jax
import jax.numpy as jnp
from jax import lax
from jax.experimental import pallas as pl
from jax.experimental.pallas import tpu as pltpu

LANES = 128
MAX_TILE_ROWS = 16384                 # 16384 * 128 * 4 B = 8 MiB per f32 input block
VMEM_LIMIT_BYTES = 48 * 1024 * 1024   # 2 inputs x 2 buffers x 8 MiB + headroom (< 64 MiB v7x VMEM)
MIN_KERNEL_BYTES = 1 * 1024 * 1024    # below this, plain jnp is already at roofline


def _num_tensorcores():
    """Best-effort TensorCore-per-device count; defaults to 1 (v5e/v6e)."""
    objs = []
    try:
        objs.append(pltpu.get_tpu_info())
    except Exception:
        pass
    try:
        devs = jax.devices()
        if devs:
            objs.append(devs[0])
    except Exception:
        pass
    for obj in objs:
        for name in ("num_cores", "num_cores_per_chip", "tensorcore_count",
                     "num_tensorcores", "cores_per_chip", "core_count"):
            v = getattr(obj, name, None)
            if isinstance(v, int) and 1 <= v <= 16:
                return min(v, 2)       # we only ever split into 2 shards
    return 1


def _make_mse_kernel(tile_rows, tiles_per_shard, total_rows, needs_mask):
    """Kernel closed over static tiling config. Accumulates into out_ref (8,128)."""
    use_fold = (tile_rows % 8 == 0)
    folds = tile_rows // 8

    def kernel(o_ref, t_ref, out_ref):
        i = pl.program_id(1)           # reduction ("arbitrary") axis within shard

        @pl.when(i == 0)
        def _():
            out_ref[...] = jnp.zeros_like(out_ref)

        d = o_ref[...].astype(jnp.float32) - t_ref[...].astype(jnp.float32)
        sq = d * d

        if not needs_mask:
            if use_fold:
                # Pure VPU cross-vreg adds into the resident (8,128) output block.
                # Two-level accumulation: per-tile partial first, then one add per
                # grid step into out_ref (limits sequential-sum drift).
                out_ref[...] += jnp.sum(sq.reshape(folds, 8, LANES), axis=0)
            else:
                # Single tile with rows % 8 != 0: exactly one grid step, so a
                # single XLU sublane reduce is fine.
                out_ref[0:1, :] += jnp.sum(sq, axis=0, keepdims=True)
        else:
            # needs_mask => multi-tile => tile_rows % 8 == 0.
            g = pl.program_id(0) * tiles_per_shard + i     # unclamped global tile id
            tile_is_full = (g + 1) * tile_rows <= total_rows

            # Common (full-tile) path: no iota/compare/select in the steady state.
            @pl.when(tile_is_full)
            def _():
                out_ref[...] += jnp.sum(sq.reshape(folds, 8, LANES), axis=0)

            # Partial last tile, or a clamped duplicate tile (bound <= 0 => all zero).
            @pl.when(jnp.logical_not(tile_is_full))
            def _():
                bound = total_rows - g * tile_rows          # scalar row bound
                row_ids = lax.broadcasted_iota(jnp.int32, sq.shape, 0)
                masked = jnp.where(row_ids < bound, sq, 0.0)
                out_ref[...] += jnp.sum(masked.reshape(folds, 8, LANES), axis=0)

    return kernel


def mse_loss(output, target, *, min_kernel_bytes=MIN_KERNEL_BYTES):
    assert output.shape == target.shape, (output.shape, target.shape)
    n = int(output.size)
    assert n > 0

    o = output.reshape(-1)
    t = target.reshape(-1)

    rows = n // LANES
    nbytes = n * o.dtype.itemsize
    if nbytes < min_kernel_bytes or rows == 0:
        # Tiny-input fast path: XLA's fused reduction is already at roofline.
        d = o.astype(jnp.float32) - t.astype(jnp.float32)
        return jnp.sum(d * d) / float(n)

    n_aligned = rows * LANES

    # Aligned prefix goes through the Pallas kernel (free reshape when aligned);
    # the <= 127-element tail is summed with plain jnp (no jnp.pad copies).
    if n_aligned != n:
        o2 = o[:n_aligned].reshape(rows, LANES)
        t2 = t[:n_aligned].reshape(rows, LANES)
        dt = o[n_aligned:].astype(jnp.float32) - t[n_aligned:].astype(jnp.float32)
        tail_sum = jnp.sum(dt * dt)
    else:
        o2 = o.reshape(rows, LANES)
        t2 = t.reshape(rows, LANES)
        tail_sum = None

    tile_rows = rows if rows <= MAX_TILE_ROWS else MAX_TILE_ROWS
    total_tiles = -(-rows // tile_rows)

    num_cores = _num_tensorcores()
    num_shards = 2 if (num_cores >= 2 and total_tiles >= 2) else 1
    tiles_per_shard = -(-total_tiles // num_shards)
    needs_mask = (num_shards * tiles_per_shard * tile_rows) != rows

    kernel = _make_mse_kernel(tile_rows, tiles_per_shard, rows, needs_mask)

    def tile_index_map(s, i):
        g = s * tiles_per_shard + i
        if needs_mask:
            # Clamp past-the-end tiles onto the last real tile; their contents are
            # fully masked to zero inside the kernel.
            g = jnp.minimum(g, total_tiles - 1)
        return (g, 0)

    if num_shards > 1:
        # TODO(synk): flip the shard axis to pltpu.CORE_PARALLEL if xprof shows a
        # single active TensorCore on multi-TC chips (v7x); PARALLEL is portable.
        dim_sems = (pltpu.PARALLEL, pltpu.ARBITRARY)
    else:
        dim_sems = (pltpu.ARBITRARY, pltpu.ARBITRARY)

    partials = pl.pallas_call(
        kernel,
        out_shape=jax.ShapeDtypeStruct((num_shards, 8, LANES), jnp.float32),
        grid_spec=pltpu.PrefetchScalarGridSpec(
            num_scalar_prefetch=0,
            grid=(num_shards, tiles_per_shard),
            in_specs=[
                pl.BlockSpec((tile_rows, LANES), tile_index_map),
                pl.BlockSpec((tile_rows, LANES), tile_index_map),
            ],
            # Lane-dense (8,128)-aligned per-shard output block; it stays resident
            # across the reduction axis and doubles as the accumulator.
            out_specs=pl.BlockSpec((None, 8, LANES), lambda s, i: (s, 0, 0)),
        ),
        compiler_params=pltpu.CompilerParams(
            dimension_semantics=dim_sems,
            vmem_limit_bytes=VMEM_LIMIT_BYTES,
        ),
    )(o2, t2)

    total = jnp.sum(partials)          # tiny (num_shards*1024 floats) reduce in XLA
    if tail_sum is not None:
        total = total + tail_sum
    # n is a static Python int: divide in the wrapper (no scalar prefetch needed).
    return total / float(n)


if __name__ == "__main__":
    key = jax.random.PRNGKey(0)

    def ref_mse(o, t):
        return jnp.mean((o.astype(jnp.float32) - t.astype(jnp.float32)) ** 2)

    cases = [
        # Canonical small NCHW case, forced through the Pallas kernel.
        ((2, 4, 16, 16), dict(min_kernel_bytes=0)),
        # Unaligned numel (lane tail + rows % 8 != 0), forced through the kernel.
        ((3, 5, 7, 11), dict(min_kernel_bytes=0)),
        # Tiny-input fast path (default threshold -> plain jnp).
        ((2, 4, 16, 16), {}),
        # Multi-tile case with a partial last tile (default threshold -> kernel).
        ((2, 4, 520, 520), {}),
    ]

    for idx, (shape, kwargs) in enumerate(cases):
        key, k1, k2 = jax.random.split(key, 3)
        output = jax.random.normal(k1, shape, dtype=jnp.float32)
        target = jax.random.normal(k2, shape, dtype=jnp.float32)

        loss = jax.block_until_ready(mse_loss(output, target, **kwargs))
        ref = jax.block_until_ready(ref_mse(output, target))
        assert jnp.allclose(loss, ref, rtol=5e-5, atol=1e-6), (idx, shape, loss, ref)

    print("KERNEL_OK")
</pallas_src>

<mosaic_0001>
module attributes {stable_mosaic.version = 11 : i64} {
  func.func @kernel(%arg0: i32, %arg1: i32, %arg2: memref<16x128xf32, #tpu.memory_space<vmem>>, %arg3: memref<16x128xf32, #tpu.memory_space<vmem>>, %arg4: memref<1x8x128xf32, #tpu.memory_space<vmem>>) attributes {dimension_semantics = [#tpu.dimension_semantics<arbitrary>, #tpu.dimension_semantics<arbitrary>], iteration_bounds = array<i64: 1, 1>, scalar_prefetch = 0 : i64, scratch_operands = 0 : i64, tpu.core_type = #tpu.core_type<tc>, window_params = [{transform_indices = @transform_0, window_bounds = array<i64: 16, 128>}, {transform_indices = @transform_1, window_bounds = array<i64: 16, 128>}, {transform_indices = @transform_2, window_bounds = array<i64: 1, 8, 128>}]} {
    %c0_i32 = arith.constant 0 : i32
    %0 = arith.cmpi eq, %arg1, %c0_i32 : i32
    %1 = arith.extui %0 : i1 to i32
    %c0_i32_0 = arith.constant 0 : i32
    %2 = arith.cmpi ne, %1, %c0_i32_0 : i32
    scf.if %2 {
      %cst_10 = arith.constant 0.000000e+00 : f32
      %15 = vector.broadcast %cst_10 : f32 to vector<8x128xf32>
      %c0_11 = arith.constant 0 : index
      %c0_12 = arith.constant 0 : index
      %c0_13 = arith.constant 0 : index
      %16 = vector.load %arg4[%c0_11, %c0_12, %c0_13] : memref<1x8x128xf32, #tpu.memory_space<vmem>>, vector<1x8x128xf32>
      %17 = vector.shape_cast %16 : vector<1x8x128xf32> to vector<8x128xf32>
      %18 = vector.shape_cast %15 : vector<8x128xf32> to vector<1x8x128xf32>
      tpu.vector_store %arg4[%c0_11, %c0_12, %c0_13], %18 {strides = array<i32>} : memref<1x8x128xf32, #tpu.memory_space<vmem>>, vector<1x8x128xf32>,
    } else {
    }
    %c0 = arith.constant 0 : index
    %c0_1 = arith.constant 0 : index
    %3 = vector.load %arg2[%c0, %c0_1] : memref<16x128xf32, #tpu.memory_space<vmem>>, vector<16x128xf32>
    %c0_2 = arith.constant 0 : index
    %c0_3 = arith.constant 0 : index
    %4 = vector.load %arg3[%c0_2, %c0_3] : memref<16x128xf32, #tpu.memory_space<vmem>>, vector<16x128xf32>
    %5 = arith.subf %3, %4 : vector<16x128xf32>
    %6 = arith.mulf %5, %5 : vector<16x128xf32>
    %c0_4 = arith.constant 0 : index
    %c0_5 = arith.constant 0 : index
    %c0_6 = arith.constant 0 : index
    %7 = vector.load %arg4[%c0_4, %c0_5, %c0_6] : memref<1x8x128xf32, #tpu.memory_space<vmem>>, vector<1x8x128xf32>
    %8 = vector.shape_cast %7 : vector<1x8x128xf32> to vector<8x128xf32>
    %9 = vector.shape_cast %6 : vector<16x128xf32> to vector<2x8x128xf32>
    %cst = arith.constant dense<0.000000e+00> : vector<8x128xf32>
    %10 = vector.multi_reduction <add>, %9, %cst [0] : vector<2x8x128xf32> to vector<8x128xf32>
    %11 = arith.addf %8, %10 : vector<8x128xf32>
    %c0_7 = arith.constant 0 : index
    %c0_8 = arith.constant 0 : index
    %c0_9 = arith.constant 0 : index
    %12 = vector.load %arg4[%c0_7, %c0_8, %c0_9] : memref<1x8x128xf32, #tpu.memory_space<vmem>>, vector<1x8x128xf32>
    %13 = vector.shape_cast %12 : vector<1x8x128xf32> to vector<8x128xf32>
    %14 = vector.shape_cast %11 : vector<8x128xf32> to vector<1x8x128xf32>
    tpu.vector_store %arg4[%c0_7, %c0_8, %c0_9], %14 {strides = array<i32>} : memref<1x8x128xf32, #tpu.memory_space<vmem>>, vector<1x8x128xf32>,
    return
  }
  func.func @transform_0(%arg0: i32, %arg1: i32) -> (i32, i32) {
    %c1_i32 = arith.constant 1 : i32
    %0 = arith.muli %arg0, %c1_i32 : i32
    %1 = arith.addi %0, %arg1 : i32
    %c0_i32 = arith.constant 0 : i32
    %c0_i32_0 = arith.constant 0 : i32
    return %1, %c0_i32 : i32, i32
  }
  func.func @transform_1(%arg0: i32, %arg1: i32) -> (i32, i32) {
    %c1_i32 = arith.constant 1 : i32
    %0 = arith.muli %arg0, %c1_i32 : i32
    %1 = arith.addi %0, %arg1 : i32
    %c0_i32 = arith.constant 0 : i32
    %c0_i32_0 = arith.constant 0 : i32
    return %1, %c0_i32 : i32, i32
  }
  func.func @transform_2(%arg0: i32, %arg1: i32) -> (i32, i32, i32) {
    %c0_i32 = arith.constant 0 : i32
    %c0_i32_0 = arith.constant 0 : i32
    %c0_i32_1 = arith.constant 0 : i32
    return %arg0, %c0_i32, %c0_i32_0 : i32, i32, i32
  }
}

</mosaic_0001>

<bundles_post_ra>
// kernel: tpu_custom_call.1
= control target key start
LH: loop header
LB: loop body
LE: loop exit
PB: predicated region body
PF: predicated region fallthrough
CT: control target
= control target key end

     0   :  { %7 = vsyncpa [#allocation3], 0  ;;  %s186_s0 = inlined_call_operand.hbm [shape: f32[16,128], index: 0, kind: input, shape index: {}]   ;;  %s187_s1 = inlined_call_operand.hbm [shape: f32[16,128], index: 1, kind: input, shape index: {}]   ;;  %s188_s2 = inlined_call_operand.hbm [shape: f32[1,8,128], index: 2, kind: output, shape index: {}]  }
   0x1   :  { %8 = vsyncpa [#allocation6], 0 }
   0x2   :  { %9 = vsyncpa [#allocation4], 0  ;;  %s157_s9 = smov [#allocation2]  }
   0x3   :  { %s19_s10 = sshll.u32 %s157_s9, 4  ;;  %s20_s10 = int_to_ptr.vmem [resolvable:$true] %s19_s10 }
   0x4   :  { %s99_s11 = scalar_lea.vmem %s20_s10, 256  ;;  %p104_p1 = scmp.lt.s32.totalorder %s20_s10, %s20_s10 }
   0x5   :  { %p100_p0 = scmp.ne.s32.totalorder %s20_s10, %s99_s11  ;;  %p105_p2 = scmp.lt.s32.totalorder %s99_s11, %s99_s11 }
   0x7   :  { %p106_p3 = por %p105_p2, %p104_p1 }
   0x9   :  { %p107_p4 = pnand %p106_p3, %p100_p0 }
   0xb   :  { %110 = shalt.err (!%p107_p4)
}
   0xc   :  { %s158_s12 = smov 128   ;;  %s159_s13 = smov 8  }
   0xd   :  { %25 = dma.hbm_to_vmem [thread:$0]  %s186_s0, 256, %s20_s10, [#allocation3], %s158_s12, %s158_s12, %s159_s13  }
   0xe   :  { %s160_s16 = smov [#allocation5]  }
   0xf   :  { %s35_s17 = sshll.u32 %s160_s16, 4  ;;  %s36_s17 = int_to_ptr.vmem [resolvable:$true] %s35_s17 }
  0x10   :  { %s119_s18 = scalar_lea.vmem %s36_s17, 256  ;;  %p124_p6 = scmp.lt.s32.totalorder %s36_s17, %s36_s17 }
  0x11   :  { %p120_p5 = scmp.ne.s32.totalorder %s36_s17, %s119_s18  ;;  %p125_p7 = scmp.lt.s32.totalorder %s119_s18, %s119_s18 }
  0x13   :  { %p126_p8 = por %p125_p7, %p124_p6 }
  0x15   :  { %p127_p9 = pnand %p126_p8, %p120_p5 }
  0x17   :  { %130 = shalt.err (!%p127_p9)
}
  0x18   :  { %41 = dma.hbm_to_vmem [thread:$0]  %s187_s1, 256, %s36_s17, [#allocation6], %s158_s12, %s158_s12, %s159_s13  }
  0x19   :  { %151 = dma.done.wait [#allocation3], 256  }
  0x1a   :  { %152 = vsyncadd [#allocation3], 4294967040 }
  0x1b   :  { %153 = dma.done.wait [#allocation6], 256  }
  0x1c   :  { %154 = vsyncadd [#allocation6], 4294967040  ;;  %v57_v0 = vld [vmem:[#allocation2] sm:$0xff]  ;;  %v58_v1 = vld [vmem:[#allocation2 + $0x8] sm:$0xff]  ;;  %s161_s0 = smov [#allocation7]  }
  0x1d   :  { %v59_v2 = vld [vmem:[#allocation5] sm:$0xff]  ;;  %v60_v3 = vld [vmem:[#allocation5 + $0x8] sm:$0xff]  ;;  %s75_s21 = sshll.u32 %s161_s0, 4  ;;  %s76_s21 = int_to_ptr.vmem [resolvable:$true] %s75_s21 }
  0x1e   :  { %v61_v4 = vsub.f32 %v57_v0, %v59_v2  ;;  %v62_v5 = vsub.f32 %v58_v1, %v60_v3  ;;  %s131_s22 = scalar_lea.vmem %s76_s21, 128  ;;  %p136_p11 = scmp.lt.s32.totalorder %s76_s21, %s76_s21 }
  0x1f   :  { %p132_p10 = scmp.ne.s32.totalorder %s76_s21, %s131_s22  ;;  %p137_p12 = scmp.lt.s32.totalorder %s131_s22, %s131_s22 }
  0x20   :  { %v63_v6 = vmul.f32 %v61_v4, %v61_v4  ;;  %v64_v7 = vmul.f32 %v62_v5, %v62_v5 }
  0x21   :  { %p138_p13 = por %p137_p12, %p136_p11 }
  0x22   :  { %v66_v8 = vadd.f32 %v64_v7, %v63_v6 }
  0x23   :  { %p139_p0 = pnand %p138_p13, %p132_p10 }
  0x24   :  { %68 = vst [vmem:[#allocation7] sm:$0xff] %v66_v8 }
  0x25   :  { %142 = shalt.err (!%p139_p0)
}
  0x26   :  { %78 = dma.vmem_to_hbm [thread:$0]  %s76_s21, 128, %s188_s2, [#allocation4]  }
  0x27   :  { %155 = dma.done.wait [#allocation4], 128  }
  0x28   :  { %156 = vsyncadd [#allocation4], 4294967168 }
  0x29   :  { %82 = vsyncpa [#allocation3], 1 }
  0x2a   :  { %83 = vsyncpa [#allocation6], 1 }
  0x2b   :  { %84 = vsyncpa [#allocation4], 1 }

</bundles_post_ra>
